<compile_context>
chip_gen: v7x
topology: tpu7x:2x2x1
jax: 0.10.0
libtpu: 0.0.40
codegen_flags: <defaults>
</compile_context>

<pallas_src>
import jax
import jax.numpy as jnp
from jax.experimental import pallas as pl
from jax.experimental.pallas import tpu as pltpu


def _cdiv(a, b):
    return (a + b - 1) // b


def _make_kernel(batch, block_rows, steps_per_core):
    """Builds a shape-specialized kernel body (all captured values are Python ints)."""

    def kernel(xt_ref, yt_ref, xl_ref, yl_ref, o_ref, acc_t_ref, acc_l_ref):
        core = pl.program_id(0)   # parallel axis (megacore split on 2-TC chips)
        step = pl.program_id(1)   # reduction axis over batch tiles

        @pl.when(step == 0)
        def _init():
            acc_t_ref[...] = jnp.zeros_like(acc_t_ref)
            acc_l_ref[...] = jnp.zeros_like(acc_l_ref)

        # Logical (un-clamped) batch-tile index: used only for the row mask so
        # a clamped duplicate tile (odd tile count split across 2 cores) and
        # the padded tail of a partial last tile contribute exactly zero.
        logical_block = core * steps_per_core + step
        rows = (logical_block * block_rows
                + jax.lax.broadcasted_iota(jnp.int32, (block_rows, 1), 0))
        row_mask = rows < batch

        xt = xt_ref[...].astype(jnp.float32)   # (block_rows, 1) discriminator logits
        yt = yt_ref[...].astype(jnp.float32)   # (block_rows, 1) discriminator targets
        xl = xl_ref[...].astype(jnp.float32)   # (block_rows, C) level logits
        yl = yl_ref[...].astype(jnp.float32)   # (block_rows, 1) level target (broadcasts)

        # Numerically-stable BCE-with-logits (PyTorch formula):
        #   max(x, 0) - x*y + log1p(exp(-|x|))
        bce_t = jnp.maximum(xt, 0.0) - xt * yt + jnp.log1p(jnp.exp(-jnp.abs(xt)))
        bce_l = jnp.maximum(xl, 0.0) - xl * yl + jnp.log1p(jnp.exp(-jnp.abs(xl)))

        # Select (not arithmetic) masking: garbage (even NaN/Inf) in masked-out
        # rows cannot leak into the sums. Hot loop stays pure VPU.
        acc_t_ref[...] += jnp.where(row_mask, bce_t, 0.0)
        acc_l_ref[...] += jnp.where(row_mask, bce_l, 0.0)

        @pl.when(step == steps_per_core - 1)
        def _finalize():
            # One-time cross-lane/sublane reduction per core.
            s_t = jnp.sum(acc_t_ref[...])
            s_l = jnp.sum(acc_l_ref[...])
            lane = jax.lax.broadcasted_iota(jnp.int32, o_ref.shape, 2)
            o_ref[...] = jnp.where(lane == 0, s_t,
                                   jnp.where(lane == 1, s_l, 0.0))

    return kernel


def trajectory_loss(output_tra, level, target_tra, target_level,
                    weight_tra=1.0, weight_level=1.0, eps=1e-8,
                    block_rows=None, tile_bytes=4 << 20):
    """Pallas implementation of TrajectoryLoss.forward. Returns a scalar f32."""
    B = output_tra.shape[0]
    C = level.shape[1]
    assert level.shape[0] == B

    # Logits keep their native floating dtype on the wire (bf16 stays bf16);
    # all BCE math is f32 inside the kernel. Targets are tiny columns -> f32.
    logit_dtype = jnp.result_type(output_tra.dtype, level.dtype)
    if logit_dtype not in (jnp.dtype(jnp.bfloat16), jnp.dtype(jnp.float16),
                           jnp.dtype(jnp.float32)):
        logit_dtype = jnp.dtype(jnp.float32)

    xt = output_tra.reshape(B, 1).astype(logit_dtype)
    xl = level.astype(logit_dtype)
    yt = target_tra.reshape(B, 1).astype(jnp.float32)
    yl = target_level.reshape(B, 1).astype(jnp.float32)  # PyTorch .unsqueeze(-1).float()

    itemsize = jnp.dtype(logit_dtype).itemsize

    if block_rows is None:
        # dtype-aware budget: ~tile_bytes of the (only large) level stream per
        # pipeline buffer; 2 buffers + f32 accumulator stays well under 32 MiB.
        budget_rows = max(8, ((tile_bytes // max(C * itemsize, 1)) // 8) * 8)
        if B <= budget_rows:
            block_rows = B          # block == full dim: always a legal tiling
        else:
            block_rows = budget_rows  # multiple of 8, <= B
    else:
        assert block_rows == B or (block_rows % 8 == 0 and block_rows <= B)

    num_blocks = _cdiv(B, block_rows)
    # Split batch tiles across the two TensorCores on v7x; on 1-TC chips this is
    # just a harmless sequential split of the same loop.
    # TODO(synk): query the actual core count instead of assuming <= 2.
    num_cores = 2 if num_blocks >= 2 else 1
    steps_per_core = _cdiv(num_blocks, num_cores)

    if num_cores * steps_per_core == num_blocks:
        def row_map(c, i):
            return (c * steps_per_core + i, 0)
    else:
        # Odd tile count over 2 cores: clamp the spare step onto the last valid
        # tile; its contribution is masked to zero in-kernel via the row mask.
        def row_map(c, i):
            return (jnp.minimum(c * steps_per_core + i, num_blocks - 1), 0)

    kernel = _make_kernel(B, block_rows, steps_per_core)

    partials = pl.pallas_call(
        kernel,
        out_shape=jax.ShapeDtypeStruct((num_cores, 8, 128), jnp.float32),
        grid=(num_cores, steps_per_core),
        in_specs=[
            pl.BlockSpec((block_rows, 1), row_map),   # output_tra logits
            pl.BlockSpec((block_rows, 1), row_map),   # target_tra
            pl.BlockSpec((block_rows, C), row_map),   # level logits
            pl.BlockSpec((block_rows, 1), row_map),   # target_level column
        ],
        out_specs=pl.BlockSpec((1, 8, 128), lambda c, i: (c, 0, 0)),
        scratch_shapes=[
            pltpu.VMEM((block_rows, 1), jnp.float32),  # tra-stream accumulator
            pltpu.VMEM((block_rows, C), jnp.float32),  # level-stream accumulator
        ],
        compiler_params=pltpu.CompilerParams(
            dimension_semantics=("parallel", "arbitrary"),
            vmem_limit_bytes=32 * 1024 * 1024,
        ),
    )(xt, yt, xl, yl)

    # Tiny scalar epilogue: combine per-core partials, apply weights / mean
    # denominators / eps exactly as the PyTorch forward does.
    sum_tra = jnp.sum(partials[:, 0, 0])
    sum_level = jnp.sum(partials[:, 0, 1])
    loss_tra = sum_tra / B
    loss_level = sum_level / (B * C) + eps
    total = weight_tra * loss_tra + weight_level * loss_level + eps
    return jnp.asarray(total, dtype=jnp.float32)


def _reference(output_tra, level, target_tra, target_level,
               weight_tra=1.0, weight_level=1.0, eps=1e-8):
    """Pure-JAX reference mirroring the PyTorch forward."""
    def bce_mean(x, y):
        x = x.astype(jnp.float32)
        y = y.astype(jnp.float32)
        return jnp.mean(jnp.maximum(x, 0.0) - x * y + jnp.log1p(jnp.exp(-jnp.abs(x))))
    B, C = level.shape
    tgt_lvl = jnp.broadcast_to(
        target_level.reshape(-1, 1).astype(jnp.float32), (B, C))
    loss_tra = bce_mean(output_tra.reshape(B, 1), target_tra.reshape(B, 1))
    loss_level = bce_mean(level, tgt_lvl) + eps
    return weight_tra * loss_tra + weight_level * loss_level + eps


if __name__ == "__main__":
    key = jax.random.PRNGKey(0)

    # --- case 1: the module's natural tiny shape (B=8, num_classes=1) -------
    k1, k2, k3, k4 = jax.random.split(key, 4)
    B, C = 8, 1
    output_tra = jax.random.normal(k1, (B, 1), dtype=jnp.float32)
    level = jax.random.normal(k2, (B, C), dtype=jnp.float32)
    target_tra = jax.random.bernoulli(k3, 0.5, (B, 1)).astype(jnp.float32)
    target_level = jax.random.bernoulli(k4, 0.5, (B,)).astype(jnp.int32)

    loss = trajectory_loss(output_tra, level, target_tra, target_level,
                           weight_tra=1.0, weight_level=1.0, eps=1e-8)
    loss = jax.block_until_ready(loss)
    ref = _reference(output_tra, level, target_tra, target_level,
                     weight_tra=1.0, weight_level=1.0, eps=1e-8)
    assert jnp.allclose(loss, ref, rtol=1e-5, atol=1e-6), (loss, ref)

    # --- case 2: multi-tile reduction + 2-way core split (odd tile count) ---
    k5, k6, k7, k8 = jax.random.split(jax.random.PRNGKey(1), 4)
    B2, C2 = 40, 1
    out2 = jax.random.normal(k5, (B2, 1), dtype=jnp.float32)
    lvl2 = jax.random.normal(k6, (B2, C2), dtype=jnp.float32)
    tt2 = jax.random.bernoulli(k7, 0.5, (B2, 1)).astype(jnp.float32)
    tl2 = jax.random.bernoulli(k8, 0.5, (B2,)).astype(jnp.int32)

    loss2 = trajectory_loss(out2, lvl2, tt2, tl2,
                            weight_tra=0.7, weight_level=1.3, eps=1e-6,
                            block_rows=8)   # 5 tiles -> 2 cores x 3 steps
    loss2 = jax.block_until_ready(loss2)
    ref2 = _reference(out2, lvl2, tt2, tl2,
                      weight_tra=0.7, weight_level=1.3, eps=1e-6)
    assert jnp.allclose(loss2, ref2, rtol=1e-5, atol=1e-6), (loss2, ref2)

    # --- case 3: lane-dense level stream (C=256), bf16 logits, partial tail -
    k9, k10, k11, k12 = jax.random.split(jax.random.PRNGKey(2), 4)
    B3, C3 = 72, 256
    out3 = jax.random.normal(k9, (B3, 1), dtype=jnp.bfloat16)
    lvl3 = jax.random.normal(k10, (B3, C3), dtype=jnp.bfloat16)
    tt3 = jax.random.bernoulli(k11, 0.5, (B3, 1)).astype(jnp.float32)
    tl3 = jax.random.bernoulli(k12, 0.5, (B3,)).astype(jnp.int32)

    loss3 = trajectory_loss(out3, lvl3, tt3, tl3,
                            weight_tra=1.0, weight_level=0.5, eps=1e-8,
                            block_rows=16)  # 5 tiles, last one partial (72 rows)
    loss3 = jax.block_until_ready(loss3)
    ref3 = _reference(out3, lvl3, tt3, tl3,
                      weight_tra=1.0, weight_level=0.5, eps=1e-8)
    assert jnp.allclose(loss3, ref3, rtol=1e-4, atol=1e-5), (loss3, ref3)

    print("KERNEL_OK")
</pallas_src>

<mosaic_0001>
module attributes {stable_mosaic.version = 11 : i64} {
  func.func @kernel(%arg0: i32, %arg1: i32, %arg2: memref<8x1xf32, #tpu.memory_space<vmem>>, %arg3: memref<8x1xf32, #tpu.memory_space<vmem>>, %arg4: memref<8x1xf32, #tpu.memory_space<vmem>>, %arg5: memref<8x1xf32, #tpu.memory_space<vmem>>, %arg6: memref<1x8x128xf32, #tpu.memory_space<vmem>>, %arg7: memref<8x1xf32, #tpu.memory_space<vmem>>, %arg8: memref<8x1xf32, #tpu.memory_space<vmem>>) attributes {dimension_semantics = [#tpu.dimension_semantics<parallel>, #tpu.dimension_semantics<arbitrary>], iteration_bounds = array<i64: 1, 1>, scalar_prefetch = 0 : i64, scratch_operands = 2 : i64, tpu.core_type = #tpu.core_type<tc>, window_params = [{transform_indices = @transform_0, window_bounds = array<i64: 8, 1>}, {transform_indices = @transform_1, window_bounds = array<i64: 8, 1>}, {transform_indices = @transform_2, window_bounds = array<i64: 8, 1>}, {transform_indices = @transform_3, window_bounds = array<i64: 8, 1>}, {transform_indices = @transform_4, window_bounds = array<i64: 1, 8, 128>}]} {
    %c0_i32 = arith.constant 0 : i32
    %0 = arith.cmpi eq, %arg1, %c0_i32 : i32
    %1 = arith.extui %0 : i1 to i32
    %c0_i32_0 = arith.constant 0 : i32
    %2 = arith.cmpi ne, %1, %c0_i32_0 : i32
    scf.if %2 {
      %cst_24 = arith.constant 0.000000e+00 : f32
      %48 = vector.broadcast %cst_24 : f32 to vector<8x1xf32>
      %c0_25 = arith.constant 0 : index
      %c0_26 = arith.constant 0 : index
      %49 = vector.load %arg7[%c0_25, %c0_26] : memref<8x1xf32, #tpu.memory_space<vmem>>, vector<8x1xf32>
      tpu.vector_store %arg7[%c0_25, %c0_26], %48 {strides = array<i32>} : memref<8x1xf32, #tpu.memory_space<vmem>>, vector<8x1xf32>,
      %cst_27 = arith.constant 0.000000e+00 : f32
      %50 = vector.broadcast %cst_27 : f32 to vector<8x1xf32>
      %c0_28 = arith.constant 0 : index
      %c0_29 = arith.constant 0 : index
      %51 = vector.load %arg8[%c0_28, %c0_29] : memref<8x1xf32, #tpu.memory_space<vmem>>, vector<8x1xf32>
      tpu.vector_store %arg8[%c0_28, %c0_29], %50 {strides = array<i32>} : memref<8x1xf32, #tpu.memory_space<vmem>>, vector<8x1xf32>,
    } else {
    }
    %c1_i32 = arith.constant 1 : i32
    %3 = arith.muli %arg0, %c1_i32 : i32
    %4 = arith.addi %3, %arg1 : i32
    %c8_i32 = arith.constant 8 : i32
    %5 = arith.muli %4, %c8_i32 : i32
    %6 = tpu.iota {dimensions = array<i32: 0>} : vector<8x1xi32>
    %7 = vector.broadcast %5 : i32 to vector<8x1xi32>
    %8 = arith.addi %7, %6 : vector<8x1xi32>
    %c8_i32_1 = arith.constant 8 : i32
    %9 = vector.broadcast %c8_i32_1 : i32 to vector<8x1xi32>
    %10 = arith.cmpi slt, %8, %9 : vector<8x1xi32>
    %c0 = arith.constant 0 : index
    %c0_2 = arith.constant 0 : index
    %11 = vector.load %arg2[%c0, %c0_2] : memref<8x1xf32, #tpu.memory_space<vmem>>, vector<8x1xf32>
    %c0_3 = arith.constant 0 : index
    %c0_4 = arith.constant 0 : index
    %12 = vector.load %arg3[%c0_3, %c0_4] : memref<8x1xf32, #tpu.memory_space<vmem>>, vector<8x1xf32>
    %c0_5 = arith.constant 0 : index
    %c0_6 = arith.constant 0 : index
    %13 = vector.load %arg4[%c0_5, %c0_6] : memref<8x1xf32, #tpu.memory_space<vmem>>, vector<8x1xf32>
    %c0_7 = arith.constant 0 : index
    %c0_8 = arith.constant 0 : index
    %14 = vector.load %arg5[%c0_7, %c0_8] : memref<8x1xf32, #tpu.memory_space<vmem>>, vector<8x1xf32>
    %cst = arith.constant 0.000000e+00 : f32
    %15 = vector.broadcast %cst : f32 to vector<8x1xf32>
    %16 = arith.maximumf %11, %15 : vector<8x1xf32>
    %17 = arith.mulf %11, %12 : vector<8x1xf32>
    %18 = arith.subf %16, %17 : vector<8x1xf32>
    %19 = math.absf %11 : vector<8x1xf32>
    %cst_9 = arith.constant 0.000000e+00 : f32
    %20 = vector.broadcast %cst_9 : f32 to vector<8x1xf32>
    %21 = arith.subf %20, %19 : vector<8x1xf32>
    %22 = math.exp %21 : vector<8x1xf32>
    %23 = math.log1p %22 : vector<8x1xf32>
    %24 = arith.addf %18, %23 : vector<8x1xf32>
    %cst_10 = arith.constant 0.000000e+00 : f32
    %25 = vector.broadcast %cst_10 : f32 to vector<8x1xf32>
    %26 = arith.maximumf %13, %25 : vector<8x1xf32>
    %27 = arith.mulf %13, %14 : vector<8x1xf32>
    %28 = arith.subf %26, %27 : vector<8x1xf32>
    %29 = math.absf %13 : vector<8x1xf32>
    %cst_11 = arith.constant 0.000000e+00 : f32
    %30 = vector.broadcast %cst_11 : f32 to vector<8x1xf32>
    %31 = arith.subf %30, %29 : vector<8x1xf32>
    %32 = math.exp %31 : vector<8x1xf32>
    %33 = math.log1p %32 : vector<8x1xf32>
    %34 = arith.addf %28, %33 : vector<8x1xf32>
    %c0_12 = arith.constant 0 : index
    %c0_13 = arith.constant 0 : index
    %35 = vector.load %arg7[%c0_12, %c0_13] : memref<8x1xf32, #tpu.memory_space<vmem>>, vector<8x1xf32>
    %cst_14 = arith.constant 0.000000e+00 : f32
    %36 = vector.broadcast %cst_14 : f32 to vector<8x1xf32>
    %37 = arith.select %10, %24, %36 : vector<8x1xi1>, vector<8x1xf32>
    %38 = arith.addf %35, %37 : vector<8x1xf32>
    %c0_15 = arith.constant 0 : index
    %c0_16 = arith.constant 0 : index
    %39 = vector.load %arg7[%c0_15, %c0_16] : memref<8x1xf32, #tpu.memory_space<vmem>>, vector<8x1xf32>
    tpu.vector_store %arg7[%c0_15, %c0_16], %38 {strides = array<i32>} : memref<8x1xf32, #tpu.memory_space<vmem>>, vector<8x1xf32>,
    %c0_17 = arith.constant 0 : index
    %c0_18 = arith.constant 0 : index
    %40 = vector.load %arg8[%c0_17, %c0_18] : memref<8x1xf32, #tpu.memory_space<vmem>>, vector<8x1xf32>
    %cst_19 = arith.constant 0.000000e+00 : f32
    %41 = vector.broadcast %cst_19 : f32 to vector<8x1xf32>
    %42 = arith.select %10, %34, %41 : vector<8x1xi1>, vector<8x1xf32>
    %43 = arith.addf %40, %42 : vector<8x1xf32>
    %c0_20 = arith.constant 0 : index
    %c0_21 = arith.constant 0 : index
    %44 = vector.load %arg8[%c0_20, %c0_21] : memref<8x1xf32, #tpu.memory_space<vmem>>, vector<8x1xf32>
    tpu.vector_store %arg8[%c0_20, %c0_21], %43 {strides = array<i32>} : memref<8x1xf32, #tpu.memory_space<vmem>>, vector<8x1xf32>,
    %c0_i32_22 = arith.constant 0 : i32
    %45 = arith.cmpi eq, %arg1, %c0_i32_22 : i32
    %46 = arith.extui %45 : i1 to i32
    %c0_i32_23 = arith.constant 0 : i32
    %47 = arith.cmpi ne, %46, %c0_i32_23 : i32
    scf.if %47 {
      %c0_24 = arith.constant 0 : index
      %c0_25 = arith.constant 0 : index
      %48 = vector.load %arg7[%c0_24, %c0_25] : memref<8x1xf32, #tpu.memory_space<vmem>>, vector<8x1xf32>
      %49 = vector.shape_cast %48 : vector<8x1xf32> to vector<1x8x1xf32>
      %cst_26 = arith.constant dense<0.000000e+00> : vector<1xf32>
      %50 = vector.multi_reduction <add>, %49, %cst_26 [1, 2] : vector<1x8x1xf32> to vector<1xf32>
      %51 = vector.shape_cast %50 : vector<1xf32> to vector<1x1x1xf32>
      %52 = vector.extract %51[0, 0, 0] : f32 from vector<1x1x1xf32>
      %c0_27 = arith.constant 0 : index
      %c0_28 = arith.constant 0 : index
      %53 = vector.load %arg8[%c0_27, %c0_28] : memref<8x1xf32, #tpu.memory_space<vmem>>, vector<8x1xf32>
      %54 = vector.shape_cast %53 : vector<8x1xf32> to vector<1x8x1xf32>
      %cst_29 = arith.constant dense<0.000000e+00> : vector<1xf32>
      %55 = vector.multi_reduction <add>, %54, %cst_29 [1, 2] : vector<1x8x1xf32> to vector<1xf32>
      %56 = vector.shape_cast %55 : vector<1xf32> to vector<1x1x1xf32>
      %57 = vector.extract %56[0, 0, 0] : f32 from vector<1x1x1xf32>
      %58 = tpu.iota {dimensions = array<i32: 2>} : vector<1x8x128xi32>
      %c0_i32_30 = arith.constant 0 : i32
      %59 = vector.broadcast %c0_i32_30 : i32 to vector<1x8x128xi32>
      %60 = arith.cmpi eq, %58, %59 : vector<1x8x128xi32>
      %c1_i32_31 = arith.constant 1 : i32
      %61 = vector.broadcast %c1_i32_31 : i32 to vector<1x8x128xi32>
      %62 = arith.cmpi eq, %58, %61 : vector<1x8x128xi32>
      %cst_32 = arith.constant 0.000000e+00 : f32
      %63 = vector.broadcast %57 : f32 to vector<1x8x128xf32>
      %64 = vector.broadcast %cst_32 : f32 to vector<1x8x128xf32>
      %65 = arith.select %62, %63, %64 : vector<1x8x128xi1>, vector<1x8x128xf32>
      %66 = vector.broadcast %52 : f32 to vector<1x8x128xf32>
      %67 = arith.select %60, %66, %65 : vector<1x8x128xi1>, vector<1x8x128xf32>
      %c0_33 = arith.constant 0 : index
      %c0_34 = arith.constant 0 : index
      %c0_35 = arith.constant 0 : index
      %68 = vector.load %arg6[%c0_33, %c0_34, %c0_35] : memref<1x8x128xf32, #tpu.memory_space<vmem>>, vector<1x8x128xf32>
      tpu.vector_store %arg6[%c0_33, %c0_34, %c0_35], %67 {strides = array<i32>} : memref<1x8x128xf32, #tpu.memory_space<vmem>>, vector<1x8x128xf32>,
    } else {
    }
    return
  }
  func.func @transform_0(%arg0: i32, %arg1: i32) -> (i32, i32) {
    %c1_i32 = arith.constant 1 : i32
    %0 = arith.muli %arg0, %c1_i32 : i32
    %1 = arith.addi %0, %arg1 : i32
    %c0_i32 = arith.constant 0 : i32
    %c0_i32_0 = arith.constant 0 : i32
    return %1, %c0_i32 : i32, i32
  }
  func.func @transform_1(%arg0: i32, %arg1: i32) -> (i32, i32) {
    %c1_i32 = arith.constant 1 : i32
    %0 = arith.muli %arg0, %c1_i32 : i32
    %1 = arith.addi %0, %arg1 : i32
    %c0_i32 = arith.constant 0 : i32
    %c0_i32_0 = arith.constant 0 : i32
    return %1, %c0_i32 : i32, i32
  }
  func.func @transform_2(%arg0: i32, %arg1: i32) -> (i32, i32) {
    %c1_i32 = arith.constant 1 : i32
    %0 = arith.muli %arg0, %c1_i32 : i32
    %1 = arith.addi %0, %arg1 : i32
    %c0_i32 = arith.constant 0 : i32
    %c0_i32_0 = arith.constant 0 : i32
    return %1, %c0_i32 : i32, i32
  }
  func.func @transform_3(%arg0: i32, %arg1: i32) -> (i32, i32) {
    %c1_i32 = arith.constant 1 : i32
    %0 = arith.muli %arg0, %c1_i32 : i32
    %1 = arith.addi %0, %arg1 : i32
    %c0_i32 = arith.constant 0 : i32
    %c0_i32_0 = arith.constant 0 : i32
    return %1, %c0_i32 : i32, i32
  }
  func.func @transform_4(%arg0: i32, %arg1: i32) -> (i32, i32, i32) {
    %c0_i32 = arith.constant 0 : i32
    %c0_i32_0 = arith.constant 0 : i32
    %c0_i32_1 = arith.constant 0 : i32
    return %arg0, %c0_i32, %c0_i32_0 : i32, i32, i32
  }
}

</mosaic_0001>

<bundles_post_ra>
// kernel: tpu_custom_call.1
= control target key start
LH: loop header
LB: loop body
LE: loop exit
PB: predicated region body
PF: predicated region fallthrough
CT: control target
= control target key end

     0   :  { %vm90_vm0 = vcmask 7168   ;;  %v257_v2 = vmov 0.0   ;;  %s314_s0 = inlined_call_operand.vmem [shape: f32[8,1], index: 0, kind: input, shape index: {}]   ;;  %s315_s1 = inlined_call_operand.vmem [shape: f32[8,1], index: 1, kind: input, shape index: {}]   ;;  %s316_s2 = inlined_call_operand.vmem [shape: f32[8,1], index: 2, kind: input, shape index: {}]   ;;  %s317_s3 = inlined_call_operand.vmem [shape: f32[8,1], index: 3, kind: input, shape index: {}]   ;;  %s318_s4 = inlined_call_operand.hbm [shape: f32[1,8,128], index: 4, kind: output, shape index: {}]  }
   0x1   :  { %v100_v0 = vld [vmem:[%s314_s0] sm:$0xff]  ;;  %91 = vst.msk [vmem:[#allocation2] sm:$0xff] %vm90_vm0, %v257_v2  ;;  %92 = vst.msk [vmem:[#allocation3] sm:$0xff] %vm90_vm0, %v257_v2 }
   0x2   :  { %v102_v1 = vld [vmem:[%s316_s2] sm:$0xff]  ;;  %v107_v3 = vand.u32 2147483647, %v100_v0 }
   0x3   :  { %v124_v4 = vand.u32 2147483647, %v102_v1 }
   0x4   :  { %9 = vsyncpa [#allocation5], 0  ;;  %v108_v5 = vsub.f32 0.0, %v107_v3  ;;  %v101_v15 = vld [vmem:[%s315_s1] sm:$0xff]  ;;  %v104_v18 = vmax.f32 %v100_v0, 0.0  ;;  %v121_v22 = vmax.f32 %v102_v1, 0.0  ;;  %v172_v59 = vlaneseq }
   0x5   :  { %v125_v6 = vsub.f32 0.0, %v124_v4  ;;  %v103_v16 = vld [vmem:[%s317_s3] sm:$0xff]  ;;  %v105_v19 = vmul.f32 %v101_v15, %v100_v0  ;;  %s258_s3 = smov [#allocation4]  }
   0x6   :  { %v109_v7 = vmul.f32 1.442695, %v108_v5  ;;  %v122_v23 = vmul.f32 %v103_v16, %v102_v1  ;;  %v173_v60 = vand.u32 127, %v172_v59  ;;  %s187_s21 = sshll.u32 %s258_s3, 4  ;;  %s188_s21 = int_to_ptr.vmem [resolvable:$true] %s187_s21 }
   0x7   :  { %v126_v8 = vmul.f32 1.442695, %v125_v6  ;;  %v106_v27 = vsub.f32 %v104_v18, %v105_v19  ;;  %s233_s23 = scalar_lea.vmem %s188_s21, 128  ;;  %p238_p1 = scmp.lt.s32.totalorder %s188_s21, %s188_s21 }
   0x8   :  { %225 = vpow2.f32 %v109_v7  ;;  %v123_v31 = vsub.f32 %v121_v22, %v122_v23  ;;  %v138_v34 = vld [vmem:[#allocation2] sm:$0xff]  ;;  %v143_v37 = vld [vmem:[#allocation3] sm:$0xff]  ;;  %vm175_vm3 = vcmp.eq.s32.totalorder %v173_v60, 1  ;;  %vm174_vm4 = vcmp.eq.s32.totalorder %v173_v60, 0  ;;  %p234_p0 = scmp.ne.s32.totalorder %s188_s21, %s233_s23  ;;  %p239_p2 = scmp.lt.s32.totalorder %s233_s23, %s233_s23 }
   0x9   :  { %227 = vpow2.f32 %v126_v8 }
   0xa   :  { %p240_p3 = por %p239_p2, %p238_p1 }
   0xc   :  { %p241_p4 = pnand %p240_p3, %p234_p0 }
  0x12   :  { %v226_v9 = vpop.eup %225 }
  0x13   :  { %v228_v10 = vpop.eup %227  ;;  %v111_v11 = vadd.f32 1.0, %v226_v9  ;;  %v114_v13 = vmul.f32 -0.5, %v226_v9  ;;  %v117_v20 = vand.u32 2147483647, %v226_v9 }
  0x14   :  { %v128_v12 = vadd.f32 1.0, %v228_v10  ;;  %v131_v14 = vmul.f32 -0.5, %v228_v10  ;;  %v134_v24 = vand.u32 2147483647, %v228_v10 }
  0x15   :  { %229 = vlog2.f32 %v111_v11  ;;  %v115_v17 = vadd.f32 1.0, %v114_v13  ;;  %vm118_vm1 = vcmp.lt.f32.partialorder %v117_v20, 0.0004427343 }
  0x16   :  { %231 = vlog2.f32 %v128_v12  ;;  %v132_v21 = vadd.f32 1.0, %v131_v14  ;;  %vm135_vm2 = vcmp.lt.f32.partialorder %v134_v24, 0.0004427343 }
  0x17   :  { %v116_v25 = vmul.f32 %v226_v9, %v115_v17 }
  0x18   :  { %v133_v28 = vmul.f32 %v228_v10, %v132_v21 }
  0x1f   :  { %v230_v26 = vpop.eup %229 }
  0x20   :  { %v232_v29 = vpop.eup %231  ;;  %v113_v30 = vmul.f32 0.6931472, %v230_v26 }
  0x21   :  { %v130_v32 = vmul.f32 0.6931472, %v232_v29 }
  0x22   :  { %v119_v33 = vsel %vm118_vm1, %v116_v25, %v113_v30 }
  0x23   :  { %v120_v35 = vadd.f32 %v119_v33, %v106_v27  ;;  %v136_v36 = vsel %vm135_vm2, %v133_v28, %v130_v32 }
  0x24   :  { %v137_v38 = vadd.f32 %v136_v36, %v123_v31 }
  0x25   :  { %v140_v39 = vadd.f32 %v138_v34, %v120_v35 }
  0x26   :  { %v145_v40 = vadd.f32 %v143_v37, %v137_v38 }
  0x27   :  { %142 = vst.msk [vmem:[#allocation2] sm:$0xff] %vm90_vm0, %v140_v39 }
  0x28   :  { %146 = vst.msk [vmem:[#allocation3] sm:$0xff] %vm90_vm0, %v145_v40 }
  0x2e   :  { %v150_v41 = vld [vmem:[#allocation2] sm:$0xff] }
  0x2f   :  { %v151_v42 = vsel %vm90_vm0, %v150_v41, 0.0  ;;  %v161_v43 = vld [vmem:[#allocation3] sm:$0xff] }
  0x30   :  { %152 = vadd.xlane.f32.xlu0 %v151_v42  ;;  %v162_v44 = vsel %vm90_vm0, %v161_v43, 0.0 }
  0x34   :  { %163 = vadd.xlane.f32.xlu0 %v162_v44 }
  0xbd   :  { %v153_v45 = vpop.xlane.xlu0 %152 }
  0xbe   :  { %v154_v46 = vrot.slane %v153_v45, 4 }
  0xc0   :  { %v155_v47 = vadd.f32 %v154_v46, %v153_v45 }
  0xc1   :  { %v164_v48 = vpop.xlane.xlu0 %163 }
  0xc2   :  { %v156_v49 = vrot.slane %v155_v47, 2  ;;  %v165_v50 = vrot.slane %v164_v48, 4 }
  0xc4   :  { %v166_v51 = vadd.f32 %v165_v50, %v164_v48  ;;  %v157_v52 = vadd.f32 %v156_v49, %v155_v47 }
  0xc6   :  { %v167_v53 = vrot.slane %v166_v51, 2  ;;  %v158_v54 = vrot.slane %v157_v52, 1 }
  0xc8   :  { %v168_v55 = vadd.f32 %v167_v53, %v166_v51  ;;  %v159_v56 = vadd.f32 %v158_v54, %v157_v52 }
  0xca   :  { %219 = vpush %v159_v56  ;;  %v169_v57 = vrot.slane %v168_v55, 1 }
  0xcc   :  { %v170_v58 = vadd.f32 %v169_v57, %v168_v55 }
  0xce   :  { %221 = vpush %v170_v58 }
  0xfb   :  { %s220_s1 = spop %219 }
  0xfc   :  { %v178_v62 = vstv %s220_s1 }
  0xff   :  { %s222_s22 = spop %221 }
 0x100   :  { %v176_v61 = vstv %s222_s22 }
 0x101   :  { %v177_v63 = vsel %vm175_vm3, %v176_v61, 0.0 }
 0x102   :  { %v179_v0 = vsel %vm174_vm4, %v178_v62, %v177_v63 }
 0x103   :  { %180 = vst [vmem:[#allocation4] sm:$0xff] %v179_v0 }
 0x104   :  { %244 = shalt.err (!%p241_p4)
}
 0x105   :  { %s245_s26 = scalar_lea.hbm %s318_s4, 128 }
 0x106   :  { %p246_p5 = scmp.ne.s32.totalorder %s318_s4, %s245_s26  ;;  %p249_p6 = scmp.lt.u32.totalorder %s245_s26, %s318_s4 }
 0x108   :  { %p251_p7 = pnand %p249_p6, %p246_p5 }
 0x10a   :  { %254 = shalt.err (!%p251_p7)
}
 0x10b   :  { %190 = dma.vmem_to_hbm [thread:$0]  %s188_s21, 128, %s318_s4, [#allocation5]  }
 0x10c   :  { %255 = dma.done.wait [#allocation5], 128  }
 0x10d   :  { %256 = vsyncadd [#allocation5], 4294967168 }
 0x10e   :  { %194 = vsyncpa [#allocation5], 1 }

</bundles_post_ra>
